<compile_context>
chip_gen: v7x
topology: tpu7x:2x2x1
jax: 0.10.0
libtpu: 0.0.40
codegen_flags: <defaults>
</compile_context>

<pallas_src>
import functools

import jax
import jax.numpy as jnp
from jax.experimental import pallas as pl
from jax.experimental.pallas import tpu as pltpu


def mlp_kernel(x_ref,
               w1_ref, b1_ref,
               w2_ref, b2_ref,
               w3_ref, b3_ref,
               w4_ref, b4_ref,
               o_ref, *, elementwise_bf16):
    # Entire hot path (4 matmuls + biases + ReLUs) fused in one kernel.
    # x arrives f32; cast to bf16 in-VMEM right before the first MXU op.
    h = x_ref[...].astype(jnp.bfloat16)                    # (tb, in_dim) bf16

    def layer(h_bf16, w_ref, b_ref):
        acc = jnp.dot(h_bf16, w_ref[...],
                      preferred_element_type=jnp.float32)  # f32 MXU accumulate
        if elementwise_bf16:
            # v6e/v7x: bf16 VALU -> 2x elementwise throughput, halves vreg/VMEM
            # pressure; result is already bf16 for the next matmul.
            return jnp.maximum(acc.astype(jnp.bfloat16) + b_ref[...], 0.0)
        # v5e: no bf16 VPU -> keep bias/ReLU in f32, cast once for next matmul.
        return jnp.maximum(acc + b_ref[...], 0.0).astype(jnp.bfloat16)

    h = layer(h, w1_ref, b1_ref)
    h = layer(h, w2_ref, b2_ref)
    h = layer(h, w3_ref, b3_ref)

    # Final layer: f32 bias add, no ReLU, direct (tb, out_dim) store.
    out = jnp.dot(h, w4_ref[...],
                  preferred_element_type=jnp.float32) + b4_ref[...]
    o_ref[...] = out.astype(o_ref.dtype)


def _default_elementwise_bf16():
    """bf16 bias/ReLU only on chips with a bf16 VPU (v6e/v7x)."""
    kind = jax.devices()[0].device_kind.lower()
    return not any(tag in kind for tag in ("v2", "v3", "v4", "v5"))


def prepare_params(params, *, elementwise_bf16):
    """One-time prep: bf16 MXU weights; biases bf16 (v6e/v7x) or f32 (v5e).

    Call this once per parameter set, NOT per forward call.
    """
    bias_dtype = jnp.bfloat16 if elementwise_bf16 else jnp.float32
    prep = {}
    for i in (1, 2, 3):
        prep[f"w{i}"] = params[f"w{i}"].astype(jnp.bfloat16)
        prep[f"b{i}"] = params[f"b{i}"].astype(bias_dtype)
    prep["w4"] = params["w4"].astype(jnp.bfloat16)
    prep["b4"] = params["b4"].astype(jnp.float32)   # final bias added in f32
    return prep


def _choose_tb(B, tb):
    """Batch tile: large (<=2048), multiple of 8, and >=2 tiles when B > 8."""
    if tb is None:
        tb = min(B, 2048)
    tb = min(tb, B)
    if B > 8:
        # Guarantee at least 2 batch tiles so both v7x TensorCores get work.
        half = ((-(-B // 2) + 7) // 8) * 8          # round8(ceil(B/2))
        tb = min(tb, half)
    if tb != B:
        tb = max(8, (tb // 8) * 8)                  # (8,128) sublane rule
    return tb


def model_medium_forward(x, prepped, *, tb=None):
    """Run the fused MLP kernel.

    x: (B, in_dim) float32 (cast to bf16 inside the kernel, in VMEM).
    prepped: output of prepare_params().
    """
    B, in_dim = x.shape
    out_dim = prepped["w4"].shape[1]
    elementwise_bf16 = prepped["b1"].dtype == jnp.bfloat16

    tb = _choose_tb(B, tb)
    grid = (pl.cdiv(B, tb),)

    def const_spec(arr):
        # Full-extent block, same block index at every grid step (Pallas skips
        # redundant re-copies for unchanged block indices; weights are tiny).
        shp = arr.shape
        return pl.BlockSpec(shp, lambda i, _n=len(shp): (0,) * _n)

    in_specs = [
        pl.BlockSpec((tb, in_dim), lambda i: (i, 0)),     # x streamed over batch
        const_spec(prepped["w1"]), const_spec(prepped["b1"]),
        const_spec(prepped["w2"]), const_spec(prepped["b2"]),
        const_spec(prepped["w3"]), const_spec(prepped["b3"]),
        const_spec(prepped["w4"]), const_spec(prepped["b4"]),
    ]
    out_spec = pl.BlockSpec((tb, out_dim), lambda i: (i, 0))

    flops = 2 * B * (in_dim * 256 + 256 * 128 + 128 * 64 + 64 * out_dim)
    bytes_accessed = (
        B * in_dim * 4                                             # f32 x in
        + sum(int(v.size) * v.dtype.itemsize for v in prepped.values())
        + B * out_dim * 4                                          # f32 out
    )

    kernel = functools.partial(mlp_kernel, elementwise_bf16=elementwise_bf16)

    return pl.pallas_call(
        kernel,
        out_shape=jax.ShapeDtypeStruct((B, out_dim), jnp.float32),
        grid_spec=pltpu.PrefetchScalarGridSpec(
            num_scalar_prefetch=0,
            grid=grid,
            in_specs=in_specs,
            out_specs=out_spec,
        ),
        compiler_params=pltpu.CompilerParams(
            dimension_semantics=("parallel",),   # megacore split over batch tiles
            vmem_limit_bytes=32 << 20,           # headroom for large tb on v5e
        ),
        cost_estimate=pl.CostEstimate(
            flops=flops, transcendentals=0, bytes_accessed=bytes_accessed),
    )(x,
      prepped["w1"], prepped["b1"],
      prepped["w2"], prepped["b2"],
      prepped["w3"], prepped["b3"],
      prepped["w4"], prepped["b4"])


def init_params(key, in_dim, out_dim):
    """Deterministic init matching nn.Linear's default U(-1/sqrt(fan_in), +1/sqrt(fan_in))."""
    dims = [in_dim, 256, 128, 64, out_dim]
    params = {}
    for idx in range(4):
        fan_in, fan_out = dims[idx], dims[idx + 1]
        key, kw, kb = jax.random.split(key, 3)
        bound = 1.0 / (fan_in ** 0.5)
        params[f"w{idx + 1}"] = jax.random.uniform(
            kw, (fan_in, fan_out), jnp.float32, minval=-bound, maxval=bound)
        params[f"b{idx + 1}"] = jax.random.uniform(
            kb, (1, fan_out), jnp.float32, minval=-bound, maxval=bound)
    return params


def reference_forward(x, prepped):
    """Pure-JAX reference mirroring the kernel's numerics."""
    elementwise_bf16 = prepped["b1"].dtype == jnp.bfloat16
    h = x.astype(jnp.bfloat16)
    for i in (1, 2, 3):
        acc = jnp.dot(h, prepped[f"w{i}"], preferred_element_type=jnp.float32)
        if elementwise_bf16:
            h = jnp.maximum(acc.astype(jnp.bfloat16) + prepped[f"b{i}"], 0.0)
        else:
            h = jnp.maximum(acc + prepped[f"b{i}"], 0.0).astype(jnp.bfloat16)
    return jnp.dot(h, prepped["w4"],
                   preferred_element_type=jnp.float32) + prepped["b4"]


if __name__ == "__main__":
    key = jax.random.PRNGKey(0)
    in_dim, out_dim, batch = 32, 16, 256

    key, kx, kp = jax.random.split(key, 3)
    x = jax.random.normal(kx, (batch, in_dim), jnp.float32)
    params = init_params(kp, in_dim, out_dim)

    # One-time parameter prep (bf16 cast) -- NOT part of the per-call path.
    prepped = prepare_params(params, elementwise_bf16=_default_elementwise_bf16())

    # Default tiling: B=256 -> tb=128 -> 2 batch tiles (keeps both v7x TCs busy).
    out = model_medium_forward(x, prepped)
    out = jax.block_until_ready(out)

    ref = reference_forward(x, prepped)
    assert out.shape == (batch, out_dim)
    assert jnp.allclose(out, ref, atol=2e-2, rtol=2e-2), "mismatch vs reference"

    print("KERNEL_OK")
</pallas_src>

<mosaic_0001>
module attributes {stable_mosaic.version = 11 : i64} {
  func.func @mlp_kernel(%arg0: i32, %arg1: memref<128x32xf32, #tpu.memory_space<vmem>>, %arg2: memref<32x256xbf16, #tpu.memory_space<vmem>>, %arg3: memref<1x256xbf16, #tpu.memory_space<vmem>>, %arg4: memref<256x128xbf16, #tpu.memory_space<vmem>>, %arg5: memref<1x128xbf16, #tpu.memory_space<vmem>>, %arg6: memref<128x64xbf16, #tpu.memory_space<vmem>>, %arg7: memref<1x64xbf16, #tpu.memory_space<vmem>>, %arg8: memref<64x16xbf16, #tpu.memory_space<vmem>>, %arg9: memref<1x16xf32, #tpu.memory_space<vmem>>, %arg10: memref<128x16xf32, #tpu.memory_space<vmem>>) attributes {dimension_semantics = [#tpu.dimension_semantics<parallel>], iteration_bounds = array<i64: 2>, scalar_prefetch = 0 : i64, scratch_operands = 0 : i64, tpu.core_type = #tpu.core_type<tc>, window_params = [{transform_indices = @transform_0, window_bounds = array<i64: 128, 32>}, {pipeline_mode = #tpu.pipeline_mode<synchronous>, transform_indices = @transform_1, window_bounds = array<i64: 32, 256>}, {pipeline_mode = #tpu.pipeline_mode<synchronous>, transform_indices = @transform_2, window_bounds = array<i64: 1, 256>}, {pipeline_mode = #tpu.pipeline_mode<synchronous>, transform_indices = @transform_3, window_bounds = array<i64: 256, 128>}, {pipeline_mode = #tpu.pipeline_mode<synchronous>, transform_indices = @transform_4, window_bounds = array<i64: 1, 128>}, {pipeline_mode = #tpu.pipeline_mode<synchronous>, transform_indices = @transform_5, window_bounds = array<i64: 128, 64>}, {pipeline_mode = #tpu.pipeline_mode<synchronous>, transform_indices = @transform_6, window_bounds = array<i64: 1, 64>}, {pipeline_mode = #tpu.pipeline_mode<synchronous>, transform_indices = @transform_7, window_bounds = array<i64: 64, 16>}, {pipeline_mode = #tpu.pipeline_mode<synchronous>, transform_indices = @transform_8, window_bounds = array<i64: 1, 16>}, {transform_indices = @transform_9, window_bounds = array<i64: 128, 16>}]} {
    %c0 = arith.constant 0 : index
    %c0_0 = arith.constant 0 : index
    %0 = vector.load %arg1[%c0, %c0_0] : memref<128x32xf32, #tpu.memory_space<vmem>>, vector<128x32xf32>
    %1 = arith.truncf %0 : vector<128x32xf32> to vector<128x32xbf16>
    %c0_1 = arith.constant 0 : index
    %c0_2 = arith.constant 0 : index
    %2 = vector.load %arg2[%c0_1, %c0_2] : memref<32x256xbf16, #tpu.memory_space<vmem>>, vector<32x256xbf16>
    %cst = arith.constant dense<0.000000e+00> : vector<128x256xf32>
    %3 = tpu.matmul %1, %2, %cst {dimension_numbers = #tpu.dot_dimension_numbers<[1], [0], [0], [1], [0, 0, 1, 1], [], []>} : vector<128x32xbf16>, vector<32x256xbf16>, vector<128x256xf32> -> vector<128x256xf32>
    %4 = arith.truncf %3 : vector<128x256xf32> to vector<128x256xbf16>
    %c0_3 = arith.constant 0 : index
    %c0_4 = arith.constant 0 : index
    %5 = vector.load %arg3[%c0_3, %c0_4] : memref<1x256xbf16, #tpu.memory_space<vmem>>, vector<1x256xbf16>
    %6 = vector.broadcast %5 : vector<1x256xbf16> to vector<128x256xbf16>
    %7 = arith.addf %4, %6 : vector<128x256xbf16>
    %cst_5 = arith.constant 0.000000e+00 : bf16
    %8 = vector.broadcast %cst_5 : bf16 to vector<128x256xbf16>
    %9 = arith.maximumf %7, %8 : vector<128x256xbf16>
    %c0_6 = arith.constant 0 : index
    %c0_7 = arith.constant 0 : index
    %10 = vector.load %arg4[%c0_6, %c0_7] : memref<256x128xbf16, #tpu.memory_space<vmem>>, vector<256x128xbf16>
    %cst_8 = arith.constant dense<0.000000e+00> : vector<128x128xf32>
    %11 = tpu.matmul %9, %10, %cst_8 {dimension_numbers = #tpu.dot_dimension_numbers<[1], [0], [0], [1], [0, 0, 1, 1], [], []>} : vector<128x256xbf16>, vector<256x128xbf16>, vector<128x128xf32> -> vector<128x128xf32>
    %12 = arith.truncf %11 : vector<128x128xf32> to vector<128x128xbf16>
    %c0_9 = arith.constant 0 : index
    %c0_10 = arith.constant 0 : index
    %13 = vector.load %arg5[%c0_9, %c0_10] : memref<1x128xbf16, #tpu.memory_space<vmem>>, vector<1x128xbf16>
    %14 = vector.broadcast %13 : vector<1x128xbf16> to vector<128x128xbf16>
    %15 = arith.addf %12, %14 : vector<128x128xbf16>
    %cst_11 = arith.constant 0.000000e+00 : bf16
    %16 = vector.broadcast %cst_11 : bf16 to vector<128x128xbf16>
    %17 = arith.maximumf %15, %16 : vector<128x128xbf16>
    %c0_12 = arith.constant 0 : index
    %c0_13 = arith.constant 0 : index
    %18 = vector.load %arg6[%c0_12, %c0_13] : memref<128x64xbf16, #tpu.memory_space<vmem>>, vector<128x64xbf16>
    %cst_14 = arith.constant dense<0.000000e+00> : vector<128x64xf32>
    %19 = tpu.matmul %17, %18, %cst_14 {dimension_numbers = #tpu.dot_dimension_numbers<[1], [0], [0], [1], [0, 0, 1, 1], [], []>} : vector<128x128xbf16>, vector<128x64xbf16>, vector<128x64xf32> -> vector<128x64xf32>
    %20 = arith.truncf %19 : vector<128x64xf32> to vector<128x64xbf16>
    %c0_15 = arith.constant 0 : index
    %c0_16 = arith.constant 0 : index
    %21 = vector.load %arg7[%c0_15, %c0_16] : memref<1x64xbf16, #tpu.memory_space<vmem>>, vector<1x64xbf16>
    %22 = vector.broadcast %21 : vector<1x64xbf16> to vector<128x64xbf16>
    %23 = arith.addf %20, %22 : vector<128x64xbf16>
    %cst_17 = arith.constant 0.000000e+00 : bf16
    %24 = vector.broadcast %cst_17 : bf16 to vector<128x64xbf16>
    %25 = arith.maximumf %23, %24 : vector<128x64xbf16>
    %c0_18 = arith.constant 0 : index
    %c0_19 = arith.constant 0 : index
    %26 = vector.load %arg8[%c0_18, %c0_19] : memref<64x16xbf16, #tpu.memory_space<vmem>>, vector<64x16xbf16>
    %cst_20 = arith.constant dense<0.000000e+00> : vector<128x16xf32>
    %27 = tpu.matmul %25, %26, %cst_20 {dimension_numbers = #tpu.dot_dimension_numbers<[1], [0], [0], [1], [0, 0, 1, 1], [], []>} : vector<128x64xbf16>, vector<64x16xbf16>, vector<128x16xf32> -> vector<128x16xf32>
    %c0_21 = arith.constant 0 : index
    %c0_22 = arith.constant 0 : index
    %28 = vector.load %arg9[%c0_21, %c0_22] : memref<1x16xf32, #tpu.memory_space<vmem>>, vector<1x16xf32>
    %29 = vector.broadcast %28 : vector<1x16xf32> to vector<128x16xf32>
    %30 = arith.addf %27, %29 : vector<128x16xf32>
    %c0_23 = arith.constant 0 : index
    %c0_24 = arith.constant 0 : index
    %31 = vector.load %arg10[%c0_23, %c0_24] : memref<128x16xf32, #tpu.memory_space<vmem>>, vector<128x16xf32>
    tpu.vector_store %arg10[%c0_23, %c0_24], %30 {strides = array<i32>} : memref<128x16xf32, #tpu.memory_space<vmem>>, vector<128x16xf32>,
    return
  }
  func.func @transform_0(%arg0: i32) -> (i32, i32) {
    %c0_i32 = arith.constant 0 : i32
    %c0_i32_0 = arith.constant 0 : i32
    return %arg0, %c0_i32 : i32, i32
  }
  func.func @transform_1(%arg0: i32) -> (i32, i32) {
    %c0_i32 = arith.constant 0 : i32
    %c0_i32_0 = arith.constant 0 : i32
    %c0_i32_1 = arith.constant 0 : i32
    return %c0_i32, %c0_i32_0 : i32, i32
  }
  func.func @transform_2(%arg0: i32) -> (i32, i32) {
    %c0_i32 = arith.constant 0 : i32
    %c0_i32_0 = arith.constant 0 : i32
    %c0_i32_1 = arith.constant 0 : i32
    return %c0_i32, %c0_i32_0 : i32, i32
  }
  func.func @transform_3(%arg0: i32) -> (i32, i32) {
    %c0_i32 = arith.constant 0 : i32
    %c0_i32_0 = arith.constant 0 : i32
    %c0_i32_1 = arith.constant 0 : i32
    return %c0_i32, %c0_i32_0 : i32, i32
  }
  func.func @transform_4(%arg0: i32) -> (i32, i32) {
    %c0_i32 = arith.constant 0 : i32
    %c0_i32_0 = arith.constant 0 : i32
    %c0_i32_1 = arith.constant 0 : i32
    return %c0_i32, %c0_i32_0 : i32, i32
  }
  func.func @transform_5(%arg0: i32) -> (i32, i32) {
    %c0_i32 = arith.constant 0 : i32
    %c0_i32_0 = arith.constant 0 : i32
    %c0_i32_1 = arith.constant 0 : i32
    return %c0_i32, %c0_i32_0 : i32, i32
  }
  func.func @transform_6(%arg0: i32) -> (i32, i32) {
    %c0_i32 = arith.constant 0 : i32
    %c0_i32_0 = arith.constant 0 : i32
    %c0_i32_1 = arith.constant 0 : i32
    return %c0_i32, %c0_i32_0 : i32, i32
  }
  func.func @transform_7(%arg0: i32) -> (i32, i32) {
    %c0_i32 = arith.constant 0 : i32
    %c0_i32_0 = arith.constant 0 : i32
    %c0_i32_1 = arith.constant 0 : i32
    return %c0_i32, %c0_i32_0 : i32, i32
  }
  func.func @transform_8(%arg0: i32) -> (i32, i32) {
    %c0_i32 = arith.constant 0 : i32
    %c0_i32_0 = arith.constant 0 : i32
    %c0_i32_1 = arith.constant 0 : i32
    return %c0_i32, %c0_i32_0 : i32, i32
  }
  func.func @transform_9(%arg0: i32) -> (i32, i32) {
    %c0_i32 = arith.constant 0 : i32
    %c0_i32_0 = arith.constant 0 : i32
    return %arg0, %c0_i32 : i32, i32
  }
}

</mosaic_0001>

<bundles_post_ra>
// kernel: tpu_custom_call.1
= control target key start
LH: loop header
LB: loop body
LE: loop exit
PB: predicated region body
PF: predicated region fallthrough
CT: control target
= control target key end

     0   :  { %s1614_s30 = smov 0   ;;  %s1890_s0 = inlined_call_operand.vmem [shape: f32[256,32], index: 0, kind: input, shape index: {}]   ;;  %s1891_s1 = inlined_call_operand.vmem [shape: bf16[32,256], index: 1, kind: input, shape index: {}]   ;;  %s1892_s2 = inlined_call_operand.vmem [shape: bf16[1,256], index: 2, kind: input, shape index: {}]   ;;  %s1893_s3 = inlined_call_operand.vmem [shape: bf16[256,128], index: 3, kind: input, shape index: {}]   ;;  %s1894_s4 = inlined_call_operand.vmem [shape: bf16[1,128], index: 4, kind: input, shape index: {}]   ;;  %s1895_s5 = inlined_call_operand.vmem [shape: bf16[128,64], index: 5, kind: input, shape index: {}]   ;;  %s1896_s6 = inlined_call_operand.vmem [shape: bf16[1,64], index: 6, kind: input, shape index: {}]   ;;  %s1897_s7 = inlined_call_operand.vmem [shape: bf16[64,16], index: 7, kind: input, shape index: {}]   ;;  %s1898_s8 = inlined_call_operand.vmem [shape: f32[1,16], index: 8, kind: input, shape index: {}]   ;;  %s1899_s9 = inlined_call_operand.vmem [shape: f32[256,16], index: 9, kind: output, shape index: {}]  }
   0x1 LB: > { %s1293_s10 = sadd.s32 4294967295, %s1560_s30   ;;  %p1297_p0 = scmp.ge.s32.totalorder %s1560_s30, 1  ;;  %s1560_s30 = sphi %s1614_s30, %s19_s30  }
   0x2   : > { %p288_p1 = scmp.lt.s32.totalorder %s1560_s30, 3 }
   0x4   : > { %p289_p2 = pnand %p1297_p0, %p288_p1 }
   0x5   : > { %v1520_v0 = vld [vmem:[%s1891_s1 + $0x4] ss:$8 sps:$4 sm:$0xff] (!%p289_p2)   ;;  %s1298_s13 = sshll.u32 (!%p289_p2), %s1293_s10, 4  ;;  %v1522_v1 = vld [vmem:[%s1891_s1] ss:$8 sps:$4 sm:$0xff] (!%p289_p2)   ;;  %v1562_v2 = vmov (!%p289_p2), 0   ;;  %v552_v50 = vlaneseq (!%p289_p2) }
   0x6   : > { %292 = sbr.rel (%p289_p2) target bundleno = 960 (0x3c0), region = 56  ;;  %442 = vmatprep.mubr.bf16.mxu0 (!%p289_p2), %v1562_v2  ;;  %p325_p3 = scmp.lt.s32.totalorder (!%p289_p2), %s1298_s13, 31  ;;  %410 = vmatprep.subr.bf16.mxu0 (!%p289_p2), %v1520_v0  ;;  %v1523_v3 = vld [vmem:[%s1891_s1 + $0x14] ss:$8 sps:$4 sm:$0xff] (!%p289_p2)   ;;  %v1525_v4 = vld [vmem:[%s1891_s1 + $0x10] ss:$8 sps:$4 sm:$0xff] (!%p289_p2)  }
   0x7   : > { %411 = vmatpush1.bf16.msra.mxu0 (!%p289_p2), %v1522_v1  ;;  %v1526_v5 = vld [vmem:[%s1893_s3 + $0x40] sm:$0xff] (!%p289_p2)   ;;  %v1528_v7 = vld [vmem:[%s1893_s3 + $0x48] sm:$0xff] (!%p289_p2)   ;;  %vm385_vm0 = vcmask (!%p289_p2), 261120   ;;  %v1530_v14 = vld [vmem:[%s1893_s3 + $0x50] sm:$0xff] (!%p289_p2)   ;;  %v1563_v48 = vmov (!%p289_p2), 1966171168  }
   0x8   : > { %412 = vmatprep.subr.bf16.mxu0 (!%p289_p2), %v1523_v3  ;;  %v1527_v6 = vld [vmem:[%s1893_s3] sm:$0xff] (!%p289_p2)   ;;  %1354 = vmatprep.subr.bf16.mxu1 (!%p289_p2), %v1526_v5  ;;  %v1529_v8 = vld [vmem:[%s1893_s3 + $0x8] sm:$0xff] (!%p289_p2)   ;;  %v1531_v15 = vld [vmem:[%s1893_s3 + $0x10] sm:$0xff] (!%p289_p2)   ;;  %v550_v49 = vunpack.c.l.s4 (!%p289_p2), %v1563_v48  ;;  %v553_v52 = vshrl.u32 (!%p289_p2), %v552_v50, 7  ;;  %vm1098_vm1 = vcmask (!%p289_p2), 523264   ;;  %vm1220_vm2 = vcmask (!%p289_p2), 130048  }
   0x9   : > { %1355 = vmatpush3.bf16.msra.mxu1 (!%p289_p2), %v1527_v6  ;;  %v1532_v17 = vld [vmem:[%s1893_s3 + $0x58] sm:$0xff] (!%p289_p2)   ;;  %v1534_v19 = vld [vmem:[%s1893_s3 + $0x60] sm:$0xff] (!%p289_p2)   ;;  %v1536_v23 = vld [vmem:[%s1893_s3 + $0x68] sm:$0xff] (!%p289_p2)  }
   0xa   : > { %1356 = vmatprep.subr.bf16.mxu1 (!%p289_p2), %v1528_v7  ;;  %v1533_v18 = vld [vmem:[%s1893_s3 + $0x18] sm:$0xff] (!%p289_p2)   ;;  %v1535_v22 = vld [vmem:[%s1893_s3 + $0x20] sm:$0xff] (!%p289_p2)   ;;  %v1537_v40 = vld [vmem:[%s1893_s3 + $0x28] sm:$0xff] (!%p289_p2)   ;;  %v551_v51 = vunpack.c.0.s8 (!%p289_p2), %v550_v49  ;;  %v1736_v59 = vsub.s32 (!%p289_p2), 0, %v553_v52 }
   0xb   : > { %413 = vmatpush1.bf16.msra.mxu0 (!%p289_p2), %v1525_v4  ;;  %v1538_v41 = vld [vmem:[%s1893_s3 + $0x70] sm:$0xff] (!%p289_p2)   ;;  %v1540_v43 = vld [vmem:[%s1893_s3 + $0x78] sm:$0xff] (!%p289_p2)   ;;  %v1542_v45 = vld [vmem:[%s1895_s5] sm:$0xff] (!%p289_p2)  }
   0xc   : > { %v1539_v42 = vld [vmem:[%s1893_s3 + $0x30] sm:$0xff] (!%p289_p2)   ;;  %v1541_v44 = vld [vmem:[%s1893_s3 + $0x38] sm:$0xff] (!%p289_p2)   ;;  %v1543_v46 = vld [vmem:[%s1895_s5 + $0x8] sm:$0xff] (!%p289_p2)   ;;  %1446 = vmatprep.subr.bf16.mxu0 (!%p289_p2), %v1542_v45  ;;  %v554_v54 = vsub.s32 (!%p289_p2), %v551_v51, %v553_v52 }
   0xd   : > { %s1901_s13 = smov (!%p325_p3, %s1298_s13), 31  ;;  %1357 = vmatpush3.bf16.msra.mxu1 %v1529_v8  ;;  %v1544_v47 = vld [vmem:[%s1895_s5 + $0x10] sm:$0xff]   ;;  %v1314_v53 = vld.sshfl [vmem:[%s1892_s2] sm:$0x11 pattern:$0x75316420] }
   0xe   : > { %s1299_s24 = sshll.u32 %s1901_s13, 3  ;;  %1358 = vmatprep.subr.bf16.mxu1 %v1530_v14  ;;  %v548_v55 = vcombine.high %v1314_v53, %v1314_v53  ;;  %v555_v56 = vrot.slane %v1314_v53, %v554_v54 }
   0xf   : > { %s1652_s29 = scalar_lea.vmem %s1890_s0, %s1299_s24  ;;  %s1853_s17 = scalar_lea.vmem %s1899_s9, %s1299_s24 }
  0x10   : > { %v337_v9 = vld [vmem:[%s1652_s29] sm:$0xff]  ;;  %v338_v10 = vld [vmem:[%s1652_s29 + $0x8] sm:$0xff]  ;;  %v339_v12 = vld [vmem:[%s1652_s29 + $0x10] sm:$0xff]  ;;  %v562_v57 = vrot.slane %v548_v55, %v554_v54  ;;  %v564_v58 = vpack.i.b16 %v555_v56, %v555_v56 }
  0x11   : > { %v353_v11 = vpack.c.bf16 %v338_v10, %v337_v9  ;;  %v340_v13 = vld [vmem:[%s1652_s29 + $0x18] sm:$0xff]  ;;  %1359 = vmatpush3.bf16.msra.mxu1 %v1531_v15  ;;  %v341_v20 = vld [vmem:[%s1652_s29 + $0x20] sm:$0xff]  ;;  %v342_v21 = vld [vmem:[%s1652_s29 + $0x28] sm:$0xff] }
  0x12   : > { %v354_v16 = vpack.c.bf16 %v340_v13, %v339_v12  ;;  %1360 = vmatprep.subr.bf16.mxu1 %v1532_v17  ;;  %v355_v24 = vpack.c.bf16 %v342_v21, %v341_v20  ;;  %v343_v25 = vld [vmem:[%s1652_s29 + $0x30] sm:$0xff]  ;;  %v344_v26 = vld [vmem:[%s1652_s29 + $0x38] sm:$0xff]  ;;  %v345_v28 = vld [vmem:[%s1652_s29 + $0x40] sm:$0xff]  ;;  %v571_v60 = vpack.i.b16 %v562_v57, %v562_v57  ;;  %v1739_v63 = vrot.slane %v564_v58, %v1736_v59 }
  0x13   : > { %1306 = vmatmul.mubr.msk.bf16.vlgmr.msra.gmra.mrb[0].mxu0 %vm385_vm0, %v353_v11  ;;  %v356_v27 = vpack.c.bf16 %v344_v26, %v343_v25  ;;  %v346_v29 = vld [vmem:[%s1652_s29 + $0x48] sm:$0xff]  ;;  %v347_v31 = vld [vmem:[%s1652_s29 + $0x50] sm:$0xff]  ;;  %v348_v32 = vld [vmem:[%s1652_s29 + $0x58] sm:$0xff] }
  0x14   : > { %452 = vmatprep.mubr.bf16.mxu0 %v1562_v2  ;;  %v357_v30 = vpack.c.bf16 %v346_v29, %v345_v28  ;;  %v358_v33 = vpack.c.bf16 %v348_v32, %v347_v31  ;;  %v349_v34 = vld [vmem:[%s1652_s29 + $0x60] sm:$0xff]  ;;  %v350_v35 = vld [vmem:[%s1652_s29 + $0x68] sm:$0xff]  ;;  %v351_v37 = vld [vmem:[%s1652_s29 + $0x70] sm:$0xff]  ;;  %1447 = vmatpush3.bf16.msra.mxu0 %v1542_v45  ;;  %v1742_v1 = vrot.slane %v571_v60, %v1736_v59 }
  0x15   : > { %1361 = vmatpush3.bf16.msra.mxu1 %v1533_v18  ;;  %v359_v36 = vpack.c.bf16 %v350_v35, %v349_v34  ;;  %v352_v38 = vld [vmem:[%s1652_s29 + $0x78] sm:$0xff]  ;;  %1448 = vmatprep.subr.bf16.mxu0 %v1543_v46 }
  0x16   : > { %1362 = vmatprep.subr.bf16.mxu1 %v1534_v19  ;;  %v360_v39 = vpack.c.bf16 %v352_v38, %v351_v37 }
  0x18   : > { %1449 = vmatpush3.bf16.msra.mxu0 %v1543_v46 }
  0x19   : > { %1363 = vmatpush3.bf16.msra.mxu1 %v1535_v22  ;;  %1450 = vmatprep.subr.bf16.mxu0 %v1544_v47 }
  0x1a   : > { %1364 = vmatprep.subr.bf16.mxu1 %v1536_v23 }
  0x1b   : > { %1307 = vmatmul.mubr.msk.bf16.gmra.mrb[4].mxu0 %vm385_vm0, %v354_v16 }
  0x1c   : > { %462 = vmatprep.mubr.bf16.mxu0 %v1562_v2  ;;  %1451 = vmatpush3.bf16.msra.mxu0 %v1544_v47 }
  0x1d   : > { %1365 = vmatpush3.bf16.msra.mxu1 %v1537_v40 }
  0x1e   : > { %1366 = vmatprep.subr.bf16.mxu1 %v1538_v41 }
  0x21   : > { %1367 = vmatpush3.bf16.msra.mxu1 %v1539_v42 }
  0x22   : > { %1368 = vmatprep.subr.bf16.mxu1 %v1540_v43 }
  0x23   : > { %1308 = vmatmul.mubr.msk.bf16.gmra.mrb[8].mxu0 %vm385_vm0, %v355_v24 }
  0x24   : > { %472 = vmatprep.mubr.bf16.mxu0 %v1562_v2 }
  0x25   : > { %1369 = vmatpush3.bf16.msra.mxu1 %v1541_v44 }
  0x2b   : > { %1309 = vmatmul.mubr.msk.bf16.gmra.mrb[12].mxu0 %vm385_vm0, %v356_v27 }
  0x2c   : > { %482 = vmatprep.mubr.bf16.mxu0 %v1562_v2 }
  0x33   : > { %1310 = vmatmul.mubr.msk.bf16.gmra.mrb[16].mxu0 %vm385_vm0, %v357_v30 }
  0x34   : > { %492 = vmatprep.mubr.bf16.mxu0 %v1562_v2 }
  0x3b   : > { %1311 = vmatmul.mubr.msk.bf16.gmra.mrb[20].mxu0 %vm385_vm0, %v358_v33 }
  0x3c   : > { %502 = vmatprep.mubr.bf16.mxu0 %v1562_v2 }
  0x43   : > { %1312 = vmatmul.mubr.msk.bf16.gmra.mrb[24].mxu0 %vm385_vm0, %v359_v36 }
  0x44   : > { %512 = vmatprep.mubr.bf16.mxu0 %v1562_v2 }
  0x4b   : > { %1313 = vmatmul.mubr.msk.bf16.gmra.mrb[28].mxu0 %vm385_vm0, %v360_v39 }
  0xe6   : > { %v444_v61 = vpop.f32.mrb[0].mxu0 }
  0xe7   : > { %v446_v62 = vpop.f32.mrb[1].mxu0 }
  0xe8   : > { %v448_v0 = vpop.f32.mrb[2].mxu0 }
  0xe9   : > { %v523_v3 = vpack.c.bf16 %v448_v0, %v444_v61  ;;  %v450_v4 = vpop.f32.mrb[3].mxu0 }
  0xea   : > { %v524_v5 = vpack.c.bf16 %v450_v4, %v446_v62 }
  0xeb   : > { %v577_v6 = vadd.bf16 %v1739_v63, %v523_v3 }
  0xec   : > { %v578_v7 = vadd.bf16 %v1742_v1, %v524_v5 }
  0xed   : > { %v593_v11 = vmax.bf16 %v1562_v2, %v577_v6 }
  0xee   : > { %v454_v8 = vpop.f32.mrb[4].mxu0  ;;  %v594_v9 = vmax.bf16 %v1562_v2, %v578_v7 }
  0xef   : > { %v456_v10 = vpop.f32.mrb[5].mxu0 }
  0xf0   : > { %v458_v12 = vpop.f32.mrb[6].mxu0  ;;  %769 = vmatprep.mubr.bf16.mxu1 %v594_v9 }
  0xf1   : > { %v525_v13 = vpack.c.bf16 %v458_v12, %v454_v8  ;;  %v460_v14 = vpop.f32.mrb[7].mxu0  ;;  %770 = vmatmul.mubr.bf16.vlgmr.msra.gmra.mrb[0].mxu1 %v593_v11 }
  0xf2   : > { %v526_v15 = vpack.c.bf16 %v460_v14, %v456_v10 }
  0xf3   : > { %v579_v16 = vadd.bf16 %v1739_v63, %v525_v13 }
  0xf4   : > { %v580_v17 = vadd.bf16 %v1742_v1, %v526_v15 }
  0xf5   : > { %v595_v21 = vmax.bf16 %v1562_v2, %v579_v16 }
  0xf6   : > { %v464_v18 = vpop.f32.mrb[8].mxu0  ;;  %v596_v19 = vmax.bf16 %v1562_v2, %v580_v17 }
  0xf7   : > { %v466_v20 = vpop.f32.mrb[9].mxu0 }
  0xf8   : > { %v468_v22 = vpop.f32.mrb[10].mxu0  ;;  %777 = vmatprep.mubr.bf16.mxu1 %v596_v19 }
  0xf9   : > { %v527_v23 = vpack.c.bf16 %v468_v22, %v464_v18  ;;  %v470_v24 = vpop.f32.mrb[11].mxu0  ;;  %778 = vmatmul.mubr.bf16.gmra.mrb[4].mxu1 %v595_v21  ;;  %v1546_v21 = vld [vmem:[%s1895_s5 + $0x20] sm:$0xff]   ;;  %v1549_v22 = vld [vmem:[%s1895_s5 + $0x38] sm:$0xff]  }
  0xfa   : > { %v528_v25 = vpack.c.bf16 %v470_v24, %v466_v20  ;;  %v1545_v20 = vld [vmem:[%s1895_s5 + $0x18] sm:$0xff]   ;;  %v1551_v24 = vld [vmem:[%s1897_s7 + $0x8] sm:$0xff]  }
  0xfb   : > { %v581_v26 = vadd.bf16 %v1739_v63, %v527_v23  ;;  %1452 = vmatprep.subr.bf16.mxu0 %v1545_v20  ;;  %v1550_v23 = vld [vmem:[%s1897_s7] sm:$0xff]  }
  0xfc   : > { %v582_v27 = vadd.bf16 %v1742_v1, %v528_v25  ;;  %1453 = vmatpush3.bf16.msra.mxu0 %v1545_v20  ;;  %1502 = vmatprep.subr.bf16.mxu1 %v1550_v23  ;;  %v842_v25 = vld [vmem:[%s1894_s4] sm:$0x1] }
  0xfd   : > { %v597_v31 = vmax.bf16 %v1562_v2, %v581_v26  ;;  %1454 = vmatprep.subr.bf16.mxu0 %v1546_v21  ;;  %1506 = vmatpush3.bf16.msra.mxu1 %v1550_v23 }
  0xfe   : > { %v474_v28 = vpop.f32.mrb[12].mxu0  ;;  %v598_v29 = vmax.bf16 %v1562_v2, %v582_v27  ;;  %1503 = vmatprep.subr.bf16.mxu1 %v1551_v24  ;;  %v844_v27 = vpack.i.b16 %v842_v25, %v842_v25 }
  0xff   : > { %v476_v30 = vpop.f32.mrb[13].mxu0 }
 0x100   : > { %v478_v32 = vpop.f32.mrb[14].mxu0  ;;  %785 = vmatprep.mubr.bf16.mxu1 %v598_v29  ;;  %1455 = vmatpush3.bf16.msra.mxu0 %v1546_v21 }
 0x101   : > { %v529_v33 = vpack.c.bf16 %v478_v32, %v474_v28  ;;  %v480_v34 = vpop.f32.mrb[15].mxu0  ;;  %786 = vmatmul.mubr.bf16.gmra.mrb[8].mxu1 %v597_v31 }
 0x102   : > { %v530_v35 = vpack.c.bf16 %v480_v34, %v476_v30  ;;  %1507 = vmatpush3.bf16.msra.mxu1 %v1551_v24 }
 0x103   : > { %v583_v36 = vadd.bf16 %v1739_v63, %v529_v33  ;;  %v1801_v33 = vrot.slane %v844_v27, %v1736_v59 }
 0x104   : > { %v584_v37 = vadd.bf16 %v1742_v1, %v530_v35 }
 0x105   : > { %v599_v41 = vmax.bf16 %v1562_v2, %v583_v36 }
 0x106   : > { %v484_v38 = vpop.f32.mrb[16].mxu0  ;;  %v600_v39 = vmax.bf16 %v1562_v2, %v584_v37 }
 0x107   : > { %v486_v40 = vpop.f32.mrb[17].mxu0 }
 0x108   : > { %v488_v42 = vpop.f32.mrb[18].mxu0  ;;  %793 = vmatprep.mubr.bf16.mxu1 %v600_v39 }
 0x109   : > { %v531_v43 = vpack.c.bf16 %v488_v42, %v484_v38  ;;  %v490_v44 = vpop.f32.mrb[19].mxu0  ;;  %794 = vmatmul.mubr.bf16.gmra.mrb[12].mxu1 %v599_v41 }
 0x10a   : > { %v532_v45 = vpack.c.bf16 %v490_v44, %v486_v40 }
 0x10b   : > { %v585_v46 = vadd.bf16 %v1739_v63, %v531_v43 }
 0x10c   : > { %v586_v47 = vadd.bf16 %v1742_v1, %v532_v45 }
 0x10d   : > { %v601_v51 = vmax.bf16 %v1562_v2, %v585_v46 }
 0x10e   : > { %v494_v48 = vpop.f32.mrb[20].mxu0  ;;  %v602_v49 = vmax.bf16 %v1562_v2, %v586_v47 }
 0x10f   : > { %v496_v50 = vpop.f32.mrb[21].mxu0 }
 0x110   : > { %v498_v52 = vpop.f32.mrb[22].mxu0  ;;  %801 = vmatprep.mubr.bf16.mxu1 %v602_v49 }
 0x111   : > { %v533_v53 = vpack.c.bf16 %v498_v52, %v494_v48  ;;  %v500_v54 = vpop.f32.mrb[23].mxu0  ;;  %802 = vmatmul.mubr.bf16.gmra.mrb[16].mxu1 %v601_v51 }
 0x112   : > { %v534_v55 = vpack.c.bf16 %v500_v54, %v496_v50 }
 0x113   : > { %v587_v56 = vadd.bf16 %v1739_v63, %v533_v53 }
 0x114   : > { %v588_v57 = vadd.bf16 %v1742_v1, %v534_v55 }
 0x115   : > { %v603_v62 = vmax.bf16 %v1562_v2, %v587_v56 }
 0x116   : > { %v504_v58 = vpop.f32.mrb[24].mxu0  ;;  %v604_v60 = vmax.bf16 %v1562_v2, %v588_v57 }
 0x117   : > { %v506_v61 = vpop.f32.mrb[25].mxu0 }
 0x118   : > { %v508_v0 = vpop.f32.mrb[26].mxu0  ;;  %809 = vmatprep.mubr.bf16.mxu1 %v604_v60 }
 0x119   : > { %v535_v3 = vpack.c.bf16 %v508_v0, %v504_v58  ;;  %v510_v4 = vpop.f32.mrb[27].mxu0  ;;  %810 = vmatmul.mubr.bf16.gmra.mrb[20].mxu1 %v603_v62 }
 0x11a   : > { %v536_v5 = vpack.c.bf16 %v510_v4, %v506_v61 }
 0x11b   : > { %v589_v6 = vadd.bf16 %v1739_v63, %v535_v3 }
 0x11c   : > { %v590_v7 = vadd.bf16 %v1742_v1, %v536_v5 }
 0x11d   : > { %v605_v11 = vmax.bf16 %v1562_v2, %v589_v6 }
 0x11e   : > { %v514_v8 = vpop.f32.mrb[28].mxu0  ;;  %v606_v9 = vmax.bf16 %v1562_v2, %v590_v7 }
 0x11f   : > { %v516_v10 = vpop.f32.mrb[29].mxu0 }
 0x120   : > { %v518_v12 = vpop.f32.mrb[30].mxu0  ;;  %817 = vmatprep.mubr.bf16.mxu1 %v606_v9 }
 0x121   : > { %v537_v13 = vpack.c.bf16 %v518_v12, %v514_v8  ;;  %v520_v14 = vpop.f32.mrb[31].mxu0  ;;  %818 = vmatmul.mubr.bf16.gmra.mrb[24].mxu1 %v605_v11 }
 0x122   : > { %v538_v15 = vpack.c.bf16 %v520_v14, %v516_v10 }
 0x123   : > { %v591_v16 = vadd.bf16 %v1739_v63, %v537_v13  ;;  %v1547_v63 = vld [vmem:[%s1895_s5 + $0x28] sm:$0xff]  }
 0x124   : > { %v592_v17 = vadd.bf16 %v1742_v1, %v538_v15  ;;  %1456 = vmatprep.subr.bf16.mxu0 %v1547_v63  ;;  %v1548_v1 = vld [vmem:[%s1895_s5 + $0x30] sm:$0xff]  }
 0x125   : > { %v607_v19 = vmax.bf16 %v1562_v2, %v591_v16  ;;  %1457 = vmatpush3.bf16.msra.mxu0 %v1547_v63 }
 0x126   : > { %v608_v18 = vmax.bf16 %v1562_v2, %v592_v17  ;;  %1458 = vmatprep.subr.bf16.mxu0 %v1548_v1 }
 0x128   : > { %825 = vmatprep.mubr.bf16.mxu1 %v608_v18 }
 0x129   : > { %826 = vmatmul.mubr.bf16.gmra.mrb[28].mxu1 %v607_v19  ;;  %1459 = vmatpush3.bf16.msra.mxu0 %v1548_v1 }
 0x12a   : > { %1460 = vmatprep.subr.bf16.mxu0 %v1549_v22 }
 0x12d   : > { %1461 = vmatpush3.bf16.msra.mxu0 %v1549_v22 }
 0x12e   : > { %1478 = vmatprep.subr.bf16.mxu0 %v1550_v23 }
 0x1c4   : > { %v1370_v26 = vpop.f32.mrb[0].mxu1 }
 0x1c5   : > { %v1371_v28 = vpop.f32.mrb[1].mxu1 }
 0x1c6   : > { %v1372_v29 = vadd.f32 %v1371_v28, %v1370_v26  ;;  %v1373_v30 = vpop.f32.mrb[2].mxu1 }
 0x1c7   : > { %v1374_v31 = vpop.f32.mrb[3].mxu1 }
 0x1c8   : > { %v1375_v32 = vadd.f32 %v1374_v31, %v1373_v30 }
 0x1ca   : > { %v834_v34 = vpack.c.bf16 %v1375_v32, %v1372_v29 }
 0x1cc   : > { %v850_v35 = vadd.bf16 %v1801_v33, %v834_v34  ;;  %v1376_v36 = vpop.f32.mrb[4].mxu1 }
 0x1cd   : > { %v1377_v37 = vpop.f32.mrb[5].mxu1 }
 0x1ce   : > { %v1378_v38 = vadd.f32 %v1377_v37, %v1376_v36  ;;  %v1379_v39 = vpop.f32.mrb[6].mxu1  ;;  %v858_v40 = vmax.bf16 %v1562_v2, %v850_v35 }
 0x1cf   : > { %v1380_v41 = vpop.f32.mrb[7].mxu1 }
 0x1d0   : > { %v1381_v42 = vadd.f32 %v1380_v41, %v1379_v39  ;;  %1462 = vmatprep.mubr.bf16.mxu0 %v858_v40  ;;  %v1552_v39 = vld [vmem:[%s1897_s7 + $0x10] sm:$0xff]   ;;  %v1553_v40 = vld [vmem:[%s1897_s7 + $0x18] sm:$0xff]  }
 0x1d1   : > { %1504 = vmatprep.subr.bf16.mxu1 %v1552_v39 }
 0x1d2   : > { %v835_v43 = vpack.c.bf16 %v1381_v42, %v1378_v38  ;;  %1508 = vmatpush3.bf16.msra.mxu1 %v1552_v39 }
 0x1d3   : > { %1505 = vmatprep.subr.bf16.mxu1 %v1553_v40 }
 0x1d4   : > { %v851_v44 = vadd.bf16 %v1801_v33, %v835_v43  ;;  %v1382_v45 = vpop.f32.mrb[8].mxu1 }
 0x1d5   : > { %v1383_v46 = vpop.f32.mrb[9].mxu1 }
 0x1d6   : > { %v859_v47 = vmax.bf16 %v1562_v2, %v851_v44  ;;  %v1384_v48 = vadd.f32 %v1383_v46, %v1382_v45  ;;  %v1385_v49 = vpop.f32.mrb[10].mxu1  ;;  %1509 = vmatpush3.bf16.msra.mxu1 %v1553_v40 }
 0x1d7   : > { %v1386_v50 = vpop.f32.mrb[11].mxu1 }
 0x1d8   : > { %v1387_v51 = vadd.f32 %v1386_v50, %v1385_v49  ;;  %1463 = vmatmul.mubr.bf16.vlgmr.msra.gmra.mrb[32].mxu0 %v859_v47 }
 0x1d9   : > { %1479 = vmatpush3.bf16.msra.mxu0 %v1550_v23 }
 0x1da   : > { %v836_v52 = vpack.c.bf16 %v1387_v51, %v1384_v48  ;;  %1480 = vmatprep.subr.bf16.mxu0 %v1551_v24 }
 0x1dc   : > { %v852_v53 = vadd.bf16 %v1801_v33, %v836_v52  ;;  %v1388_v54 = vpop.f32.mrb[12].mxu1 }
 0x1dd   : > { %v1389_v55 = vpop.f32.mrb[13].mxu1  ;;  %1481 = vmatpush3.bf16.msra.mxu0 %v1551_v24 }
 0x1de   : > { %v1390_v56 = vadd.f32 %v1389_v55, %v1388_v54  ;;  %v1391_v57 = vpop.f32.mrb[14].mxu1  ;;  %v860_v58 = vmax.bf16 %v1562_v2, %v852_v53  ;;  %1482 = vmatprep.subr.bf16.mxu0 %v1552_v39 }
 0x1df   : > { %v1392_v60 = vpop.f32.mrb[15].mxu1 }
 0x1e0   : > { %v1393_v61 = vadd.f32 %v1392_v60, %v1391_v57  ;;  %1466 = vmatprep.mubr.bf16.mxu0 %v860_v58 }
 0x1e1   : > { %1483 = vmatpush3.bf16.msra.mxu0 %v1552_v39 }
 0x1e2   : > { %v837_v62 = vpack.c.bf16 %v1393_v61, %v1390_v56  ;;  %1484 = vmatprep.subr.bf16.mxu0 %v1553_v40 }
 0x1e4   : > { %v853_v0 = vadd.bf16 %v1801_v33, %v837_v62  ;;  %v1394_v3 = vpop.f32.mrb[16].mxu1 }
 0x1e5   : > { %v1395_v4 = vpop.f32.mrb[17].mxu1  ;;  %1485 = vmatpush3.bf16.msra.mxu0 %v1553_v40 }
 0x1e6   : > { %v1396_v5 = vadd.f32 %v1395_v4, %v1394_v3  ;;  %v1397_v6 = vpop.f32.mrb[18].mxu1  ;;  %v861_v7 = vmax.bf16 %v1562_v2, %v853_v0 }
 0x1e7   : > { %v1398_v8 = vpop.f32.mrb[19].mxu1 }
 0x1e8   : > { %v1399_v9 = vadd.f32 %v1398_v8, %v1397_v6  ;;  %1467 = vmatmul.mubr.bf16.gmra.mrb[36].mxu0 %v861_v7 }
 0x1ea   : > { %v838_v10 = vpack.c.bf16 %v1399_v9, %v1396_v5 }
 0x1ec   : > { %v854_v11 = vadd.bf16 %v1801_v33, %v838_v10  ;;  %v1400_v12 = vpop.f32.mrb[20].mxu1 }
 0x1ed   : > { %v1401_v13 = vpop.f32.mrb[21].mxu1 }
 0x1ee   : > { %v1402_v14 = vadd.f32 %v1401_v13, %v1400_v12  ;;  %v1403_v15 = vpop.f32.mrb[22].mxu1  ;;  %v862_v16 = vmax.bf16 %v1562_v2, %v854_v11 }
 0x1ef   : > { %v1404_v17 = vpop.f32.mrb[23].mxu1 }
 0x1f0   : > { %v1405_v18 = vadd.f32 %v1404_v17, %v1403_v15  ;;  %1470 = vmatprep.mubr.bf16.mxu0 %v862_v16 }
 0x1f2   : > { %v839_v19 = vpack.c.bf16 %v1405_v18, %v1402_v14 }
 0x1f4   : > { %v855_v20 = vadd.bf16 %v1801_v33, %v839_v19  ;;  %v1406_v21 = vpop.f32.mrb[24].mxu1 }
 0x1f5   : > { %v1407_v63 = vpop.f32.mrb[25].mxu1 }
 0x1f6   : > { %v1408_v1 = vadd.f32 %v1407_v63, %v1406_v21  ;;  %v1409_v22 = vpop.f32.mrb[26].mxu1  ;;  %v863_v23 = vmax.bf16 %v1562_v2, %v855_v20  ;;  %v1339_v63 = vld [vmem:[%s1898_s8] ss:$0 sm:$0xff] }
 0x1f7   : > { %v1410_v24 = vpop.f32.mrb[27].mxu1 }
 0x1f8   : > { %v1411_v25 = vadd.f32 %v1410_v24, %v1409_v22  ;;  %1471 = vmatmul.mubr.bf16.gmra.mrb[40].mxu0 %v863_v23 }
 0x1fa   : > { %v840_v26 = vpack.c.bf16 %v1411_v25, %v1408_v1 }
 0x1fc   : > { %v856_v27 = vadd.bf16 %v1801_v33, %v840_v26  ;;  %v1412_v28 = vpop.f32.mrb[28].mxu1 }
 0x1fd   : > { %v1413_v29 = vpop.f32.mrb[29].mxu1 }
 0x1fe   : > { %v1414_v30 = vadd.f32 %v1413_v29, %v1412_v28  ;;  %v1415_v31 = vpop.f32.mrb[30].mxu1  ;;  %v864_v32 = vmax.bf16 %v1562_v2, %v856_v27 }
 0x1ff   : > { %v1416_v34 = vpop.f32.mrb[31].mxu1 }
 0x200   : > { %v1417_v35 = vadd.f32 %v1416_v34, %v1415_v31  ;;  %1474 = vmatprep.mubr.bf16.mxu0 %v864_v32 }
 0x202   : > { %v841_v36 = vpack.c.bf16 %v1417_v35, %v1414_v30 }
 0x204   : > { %v857_v37 = vadd.bf16 %v1801_v33, %v841_v36  ;;  %v1035_v33 = vld [vmem:[%s1896_s6] sm:$0x1] }
 0x205   : > { %v1037_v41 = vpack.i.b16 %v1035_v33, %v1035_v33 }
 0x206   : > { %v865_v38 = vmax.bf16 %v1562_v2, %v857_v37 }
 0x207   : > { %v1042_v44 = vrot.slane %v1037_v41, %v1736_v59 }
 0x208   : > { %1475 = vmatmul.mubr.bf16.gmra.mrb[44].mxu0 %v865_v38 }
 0x2ab   : > { %v1464_v42 = vpop.f32.mrb[32].mxu0 }
 0x2ac   : > { %v964_v43 = vpop.f32.mrb[33].mxu0 }
 0x2ad   : > { %v1465_v45 = vpop.f32.mrb[34].mxu0 }
 0x2ae   : > { %v1028_v46 = vpack.c.bf16 %v1465_v45, %v1464_v42  ;;  %v967_v47 = vpop.f32.mrb[35].mxu0 }
 0x2af   : > { %v1027_v48 = vpack.c.bf16 %v967_v47, %v964_v43 }
 0x2b0   : > { %v1044_v49 = vadd.bf16 %v1042_v44, %v1028_v46 }
 0x2b1   : > { %v1043_v50 = vadd.bf16 %v1042_v44, %v1027_v48 }
 0x2b2   : > { %v1052_v52 = vmax.bf16 %v1562_v2, %v1044_v49 }
 0x2b3   : > { %v1051_v51 = vmax.bf16 %v1562_v2, %v1043_v50 }
 0x2b5   : > { %1486 = vmatprep.mubr.msk.bf16.mxu0 %vm1098_vm1, %v1051_v51 }
 0x2b6   : > { %1487 = vmatmul.mubr.msk.bf16.vlgmr.msra.gmra.mrb[48].mxu0 %vm1098_vm1, %v1052_v52 }
 0x2bb   : > { %v1468_v53 = vpop.f32.mrb[36].mxu0 }
 0x2bc   : > { %v980_v54 = vpop.f32.mrb[37].mxu0 }
 0x2bd   : > { %v1469_v55 = vpop.f32.mrb[38].mxu0 }
 0x2be   : > { %v1030_v56 = vpack.c.bf16 %v1469_v55, %v1468_v53  ;;  %v983_v59 = vpop.f32.mrb[39].mxu0 }
 0x2bf   : > { %v1029_v57 = vpack.c.bf16 %v983_v59, %v980_v54 }
 0x2c0   : > { %v1046_v58 = vadd.bf16 %v1042_v44, %v1030_v56 }
 0x2c1   : > { %v1045_v60 = vadd.bf16 %v1042_v44, %v1029_v57 }
 0x2c2   : > { %v1054_v62 = vmax.bf16 %v1562_v2, %v1046_v58 }
 0x2c3   : > { %v1053_v61 = vmax.bf16 %v1562_v2, %v1045_v60 }
 0x2c5   : > { %1490 = vmatprep.mubr.msk.bf16.mxu1 %vm1098_vm1, %v1053_v61 }
 0x2c6   : > { %1491 = vmatmul.mubr.msk.bf16.vlgmr.msra.gmra.mrb[32].mxu1 %vm1098_vm1, %v1054_v62 }
 0x2cb   : > { %v1472_v0 = vpop.f32.mrb[40].mxu0 }
 0x2cc   : > { %v996_v3 = vpop.f32.mrb[41].mxu0 }
 0x2cd   : > { %v1473_v4 = vpop.f32.mrb[42].mxu0 }
 0x2ce   : > { %v1032_v5 = vpack.c.bf16 %v1473_v4, %v1472_v0  ;;  %v999_v6 = vpop.f32.mrb[43].mxu0 }
 0x2cf   : > { %v1031_v7 = vpack.c.bf16 %v999_v6, %v996_v3 }
 0x2d0   : > { %v1048_v8 = vadd.bf16 %v1042_v44, %v1032_v5 }
 0x2d1   : > { %v1047_v9 = vadd.bf16 %v1042_v44, %v1031_v7 }
 0x2d2   : > { %v1056_v11 = vmax.bf16 %v1562_v2, %v1048_v8 }
 0x2d3   : > { %v1055_v10 = vmax.bf16 %v1562_v2, %v1047_v9 }
 0x2d5   : > { %1494 = vmatprep.mubr.msk.bf16.mxu1 %vm1098_vm1, %v1055_v10 }
 0x2d6   : > { %1495 = vmatmul.mubr.msk.bf16.gmra.mrb[36].mxu1 %vm1098_vm1, %v1056_v11 }
 0x2db   : > { %v1476_v12 = vpop.f32.mrb[44].mxu0 }
 0x2dc   : > { %v1012_v13 = vpop.f32.mrb[45].mxu0 }
 0x2dd   : > { %v1477_v14 = vpop.f32.mrb[46].mxu0 }
 0x2de   : > { %v1034_v15 = vpack.c.bf16 %v1477_v14, %v1476_v12  ;;  %v1015_v16 = vpop.f32.mrb[47].mxu0 }
 0x2df   : > { %v1033_v17 = vpack.c.bf16 %v1015_v16, %v1012_v13 }
 0x2e0   : > { %v1050_v18 = vadd.bf16 %v1042_v44, %v1034_v15 }
 0x2e1   : > { %v1049_v19 = vadd.bf16 %v1042_v44, %v1033_v17 }
 0x2e2   : > { %v1058_v21 = vmax.bf16 %v1562_v2, %v1050_v18 }
 0x2e3   : > { %v1057_v20 = vmax.bf16 %v1562_v2, %v1049_v19 }
 0x2e5   : > { %1498 = vmatprep.mubr.msk.bf16.mxu1 %vm1098_vm1, %v1057_v20 }
 0x2e6   : > { %1499 = vmatmul.mubr.msk.bf16.gmra.mrb[40].mxu1 %vm1098_vm1, %v1058_v21 }
 0x389   : > { %v1488_v1 = vpop.f32.mrb[48].mxu0 }
 0x38a   : > { %v1166_v2 = vadd.f32 %v1488_v1, %v1339_v63  ;;  %v1157_v22 = vpop.f32.mrb[49].mxu0 }
 0x38b   : > { %v1158_v23 = vadd.f32 %v1339_v63, %v1157_v22  ;;  %v1489_v24 = vpop.f32.mrb[50].mxu0 }
 0x38c   : > { %1223 = vst.msk [vmem:[%s1853_s17 + $0x10] sm:$0xff] %vm1220_vm2, %v1166_v2  ;;  %v1169_v25 = vadd.f32 %v1489_v24, %v1339_v63  ;;  %v1160_v26 = vpop.f32.mrb[51].mxu0 }
 0x38d   : > { %1221 = vst.msk [vmem:[%s1853_s17] sm:$0xff] %vm1220_vm2, %v1158_v23  ;;  %v1161_v27 = vadd.f32 %v1339_v63, %v1160_v26 }
 0x38e   : > { %1224 = vst.msk [vmem:[%s1853_s17 + $0x18] sm:$0xff] %vm1220_vm2, %v1169_v25 }
 0x38f   : > { %1222 = vst.msk [vmem:[%s1853_s17 + $0x8] sm:$0xff] %vm1220_vm2, %v1161_v27 }
 0x399   : > { %v1492_v28 = vpop.f32.mrb[32].mxu1 }
 0x39a   : > { %v1182_v29 = vadd.f32 %v1492_v28, %v1339_v63  ;;  %v1173_v30 = vpop.f32.mrb[33].mxu1 }
 0x39b   : > { %v1174_v31 = vadd.f32 %v1339_v63, %v1173_v30  ;;  %v1493_v32 = vpop.f32.mrb[34].mxu1 }
 0x39c   : > { %1227 = vst.msk [vmem:[%s1853_s17 + $0x30] sm:$0xff] %vm1220_vm2, %v1182_v29  ;;  %v1185_v34 = vadd.f32 %v1493_v32, %v1339_v63  ;;  %v1176_v35 = vpop.f32.mrb[35].mxu1 }
 0x39d   : > { %1225 = vst.msk [vmem:[%s1853_s17 + $0x20] sm:$0xff] %vm1220_vm2, %v1174_v31  ;;  %v1177_v36 = vadd.f32 %v1339_v63, %v1176_v35 }
 0x39e   : > { %1228 = vst.msk [vmem:[%s1853_s17 + $0x38] sm:$0xff] %vm1220_vm2, %v1185_v34 }
 0x39f   : > { %1226 = vst.msk [vmem:[%s1853_s17 + $0x28] sm:$0xff] %vm1220_vm2, %v1177_v36 }
 0x3a9   : > { %v1496_v37 = vpop.f32.mrb[36].mxu1 }
 0x3aa   : > { %v1198_v38 = vadd.f32 %v1496_v37, %v1339_v63  ;;  %v1189_v39 = vpop.f32.mrb[37].mxu1 }
 0x3ab   : > { %v1190_v40 = vadd.f32 %v1339_v63, %v1189_v39  ;;  %v1497_v33 = vpop.f32.mrb[38].mxu1 }
 0x3ac   : > { %1231 = vst.msk [vmem:[%s1853_s17 + $0x50] sm:$0xff] %vm1220_vm2, %v1198_v38  ;;  %v1201_v41 = vadd.f32 %v1497_v33, %v1339_v63  ;;  %v1192_v42 = vpop.f32.mrb[39].mxu1 }
 0x3ad   : > { %1229 = vst.msk [vmem:[%s1853_s17 + $0x40] sm:$0xff] %vm1220_vm2, %v1190_v40  ;;  %v1193_v43 = vadd.f32 %v1339_v63, %v1192_v42 }
 0x3ae   : > { %1232 = vst.msk [vmem:[%s1853_s17 + $0x58] sm:$0xff] %vm1220_vm2, %v1201_v41 }
 0x3af   : > { %1230 = vst.msk [vmem:[%s1853_s17 + $0x48] sm:$0xff] %vm1220_vm2, %v1193_v43 }
 0x3b9   : > { %v1500_v44 = vpop.f32.mrb[40].mxu1 }
 0x3ba   : > { %v1214_v45 = vadd.f32 %v1500_v44, %v1339_v63  ;;  %v1205_v46 = vpop.f32.mrb[41].mxu1 }
 0x3bb   : > { %v1206_v47 = vadd.f32 %v1339_v63, %v1205_v46  ;;  %v1501_v48 = vpop.f32.mrb[42].mxu1 }
 0x3bc   : > { %1235 = vst.msk [vmem:[%s1853_s17 + $0x70] sm:$0xff] %vm1220_vm2, %v1214_v45  ;;  %v1217_v49 = vadd.f32 %v1501_v48, %v1339_v63  ;;  %v1208_v50 = vpop.f32.mrb[43].mxu1 }
 0x3bd   : > { %1233 = vst.msk [vmem:[%s1853_s17 + $0x60] sm:$0xff] %vm1220_vm2, %v1206_v47  ;;  %v1209_v51 = vadd.f32 %v1339_v63, %v1208_v50 }
 0x3be   : > { %1236 = vst.msk [vmem:[%s1853_s17 + $0x78] sm:$0xff] %vm1220_vm2, %v1217_v49 }
 0x3bf   : > { %1234 = vst.msk [vmem:[%s1853_s17 + $0x68] sm:$0xff] %vm1220_vm2, %v1209_v51 }
 0x3c0 PF: > { %s19_s30 = sadd.s32 1, %s1560_s30  }
 0x3c1   : > { %p16_p4 = scmp.ge.s32.totalorder %s19_s30, 4  }
 0x3c3   :  { %18 = sbr.rel (!%p16_p4) target bundleno = 1 (0x1), region = 86 }

</bundles_post_ra>
